<compile_context>
chip_gen: v7x
topology: tpu7x:2x2x1
jax: 0.10.0
libtpu: 0.0.40
codegen_flags: <defaults>
</compile_context>

<pallas_src>
import functools

import jax
import jax.numpy as jnp
from jax.experimental import pallas as pl
from jax.experimental.pallas import tpu as pltpu


def _round_up(x, m):
    return ((x + m - 1) // m) * m


# ----------------------------------------------------------------------------
# Pallas kernel: (patches @ weight) + bias, optionally followed by tanh.
# All operands are lane-dense (last dim a multiple of 128).
# ----------------------------------------------------------------------------
def _matmul_bias_act_kernel(p_ref, w_ref, b_ref, o_ref, *, apply_tanh):
    acc = jnp.dot(p_ref[...], w_ref[...], preferred_element_type=jnp.float32)
    acc = acc + b_ref[...]                      # bias broadcast over rows
    if apply_tanh:
        acc = jnp.tanh(acc)
    o_ref[...] = acc.astype(o_ref.dtype)


def fused_matmul_bias_act(patches, w2d, bias, *, apply_tanh, num_tiles=2):
    """[M, K] @ [K, Nout] + bias (+ tanh) with lane-dense padding.

    K and Nout are zero-padded to multiples of 128; M is split into exactly
    `num_tiles` row tiles (2 -> both v7x TensorCores get a tile).
    """
    M, K = patches.shape
    Kin, Nout = w2d.shape
    assert Kin == K
    Kp = _round_up(K, 128)
    Np = _round_up(Nout, 128)
    tm = _round_up(pl.cdiv(M, num_tiles), 8)
    Mp = tm * num_tiles

    patches_p = jnp.pad(patches, ((0, Mp - M), (0, Kp - K)))
    w_p = jnp.pad(w2d, ((0, Kp - K), (0, Np - Nout)))
    bias_p = jnp.pad(bias, (0, Np - Nout)).reshape(1, Np)

    out = pl.pallas_call(
        functools.partial(_matmul_bias_act_kernel, apply_tanh=apply_tanh),
        out_shape=jax.ShapeDtypeStruct((Mp, Np), patches.dtype),
        grid_spec=pltpu.PrefetchScalarGridSpec(
            num_scalar_prefetch=0,
            grid=(num_tiles,),
            in_specs=[
                pl.BlockSpec((tm, Kp), lambda i: (i, 0)),   # patch row tile
                pl.BlockSpec((Kp, Np), lambda i: (0, 0)),   # full weight, resident
                pl.BlockSpec((1, Np), lambda i: (0, 0)),    # bias, resident
            ],
            out_specs=pl.BlockSpec((tm, Np), lambda i: (i, 0)),
        ),
        compiler_params=pltpu.CompilerParams(
            dimension_semantics=("parallel",)),
    )(patches_p, w_p, bias_p)
    return out[:M, :Nout]


# ----------------------------------------------------------------------------
# ModelTanh forward:
#   conv(1->12, k=8, s=3, p=2) -> tanh -> conv(12->24, k=12, s=15, p=4, d=3)
# Input/weights use PyTorch layouts (NCHW / OIHW); output is NCHW.
# ----------------------------------------------------------------------------
def model_tanh_forward(x, params):
    N = x.shape[0]

    # ---- conv1 + tanh (Pallas) -------------------------------------------
    # Patches come out directly in NHWC with channel order (c, kh, kw), which
    # matches weight.reshape(OC, IC*KH*KW); no gather/transpose needed.
    p1 = jax.lax.conv_general_dilated_patches(
        x, filter_shape=(8, 8), window_strides=(3, 3),
        padding=[(2, 2), (2, 2)],
        dimension_numbers=("NCHW", "OIHW", "NHWC"))
    _, OH1, OW1, K1 = p1.shape
    w1_2d = params["w1"].reshape(12, K1).T                  # [K1, 12]
    v2 = fused_matmul_bias_act(p1.reshape(N * OH1 * OW1, K1), w1_2d,
                               params["b1"], apply_tanh=True, num_tiles=2)
    v2 = v2.reshape(N, OH1, OW1, 12)                        # stays NHWC

    # ---- conv2 (plain JAX GEMM; M == batch, too small for a Pallas launch) --
    p2 = jax.lax.conv_general_dilated_patches(
        v2, filter_shape=(12, 12), window_strides=(15, 15),
        padding=[(4, 4), (4, 4)], rhs_dilation=(3, 3),
        dimension_numbers=("NHWC", "HWIO", "NHWC"))
    _, OH2, OW2, K2 = p2.shape
    w2_2d = params["w2"].reshape(24, K2).T                  # [K2, 24]
    v3 = jnp.dot(p2.reshape(N * OH2 * OW2, K2), w2_2d,
                 preferred_element_type=jnp.float32) + params["b2"][None, :]
    return v3.reshape(N, OH2, OW2, 24).transpose(0, 3, 1, 2)  # back to NCHW


def init_params(key):
    k1, k2, k3, k4 = jax.random.split(key, 4)
    # PyTorch-style uniform(-1/sqrt(fan_in), 1/sqrt(fan_in)) init, deterministic.
    fan1 = 1 * 8 * 8
    fan2 = 12 * 12 * 12
    b1lim = 1.0 / (fan1 ** 0.5)
    b2lim = 1.0 / (fan2 ** 0.5)
    return {
        "w1": jax.random.uniform(k1, (12, 1, 8, 8), jnp.float32, -b1lim, b1lim),
        "b1": jax.random.uniform(k2, (12,), jnp.float32, -b1lim, b1lim),
        "w2": jax.random.uniform(k3, (24, 12, 12, 12), jnp.float32, -b2lim, b2lim),
        "b2": jax.random.uniform(k4, (24,), jnp.float32, -b2lim, b2lim),
    }


def _reference_forward(x, params):
    """Pure-JAX reference (lax conv) for a correctness check."""
    dn = jax.lax.conv_dimension_numbers(x.shape, params["w1"].shape,
                                        ("NCHW", "OIHW", "NCHW"))
    v1 = jax.lax.conv_general_dilated(x, params["w1"], (3, 3), [(2, 2), (2, 2)],
                                      dimension_numbers=dn)
    v1 = v1 + params["b1"][None, :, None, None]
    v2 = jnp.tanh(v1)
    dn2 = jax.lax.conv_dimension_numbers(v2.shape, params["w2"].shape,
                                         ("NCHW", "OIHW", "NCHW"))
    v3 = jax.lax.conv_general_dilated(v2, params["w2"], (15, 15), [(4, 4), (4, 4)],
                                      rhs_dilation=(3, 3), dimension_numbers=dn2)
    v3 = v3 + params["b2"][None, :, None, None]
    return v3


if __name__ == "__main__":
    key = jax.random.PRNGKey(0)
    kx, kp = jax.random.split(key)
    params = init_params(kp)

    # Smallest clean spatial size keeping conv2 (effective kernel 34) valid:
    # 80 -> conv1: 26x26 -> conv2: 1x1.
    x = jax.random.normal(kx, (2, 1, 80, 80), jnp.float32)

    fwd = jax.jit(model_tanh_forward)
    out = jax.block_until_ready(fwd(x, params))
    assert out.shape == (2, 24, 1, 1), out.shape

    ref = jax.block_until_ready(_reference_forward(x, params))
    assert jnp.allclose(out, ref, rtol=2e-3, atol=2e-3), "mismatch vs reference"

    print("KERNEL_OK")
</pallas_src>

<mosaic_0001>
module attributes {stable_mosaic.version = 11 : i64} {
  func.func @_matmul_bias_act_kernel(%arg0: i32, %arg1: memref<680x128xf32, #tpu.memory_space<vmem>>, %arg2: memref<128x128xf32, #tpu.memory_space<vmem>>, %arg3: memref<1x128xf32, #tpu.memory_space<vmem>>, %arg4: memref<680x128xf32, #tpu.memory_space<vmem>>) attributes {dimension_semantics = [#tpu.dimension_semantics<parallel>], iteration_bounds = array<i64: 2>, scalar_prefetch = 0 : i64, scratch_operands = 0 : i64, tpu.core_type = #tpu.core_type<tc>, window_params = [{transform_indices = @transform_0, window_bounds = array<i64: 680, 128>}, {pipeline_mode = #tpu.pipeline_mode<synchronous>, transform_indices = @transform_1, window_bounds = array<i64: 128, 128>}, {pipeline_mode = #tpu.pipeline_mode<synchronous>, transform_indices = @transform_2, window_bounds = array<i64: 1, 128>}, {transform_indices = @transform_3, window_bounds = array<i64: 680, 128>}]} {
    %c0 = arith.constant 0 : index
    %c0_0 = arith.constant 0 : index
    %0 = vector.load %arg1[%c0, %c0_0] : memref<680x128xf32, #tpu.memory_space<vmem>>, vector<680x128xf32>
    %c0_1 = arith.constant 0 : index
    %c0_2 = arith.constant 0 : index
    %1 = vector.load %arg2[%c0_1, %c0_2] : memref<128x128xf32, #tpu.memory_space<vmem>>, vector<128x128xf32>
    %cst = arith.constant dense<0.000000e+00> : vector<680x128xf32>
    %2 = tpu.matmul %0, %1, %cst {dimension_numbers = #tpu.dot_dimension_numbers<[1], [0], [0], [1], [0, 0, 1, 1], [], []>} : vector<680x128xf32>, vector<128x128xf32>, vector<680x128xf32> -> vector<680x128xf32>
    %c0_3 = arith.constant 0 : index
    %c0_4 = arith.constant 0 : index
    %3 = vector.load %arg3[%c0_3, %c0_4] : memref<1x128xf32, #tpu.memory_space<vmem>>, vector<1x128xf32>
    %4 = vector.broadcast %3 : vector<1x128xf32> to vector<680x128xf32>
    %5 = arith.addf %2, %4 : vector<680x128xf32>
    %6 = math.tanh %5 : vector<680x128xf32>
    %c0_5 = arith.constant 0 : index
    %c0_6 = arith.constant 0 : index
    %7 = vector.load %arg4[%c0_5, %c0_6] : memref<680x128xf32, #tpu.memory_space<vmem>>, vector<680x128xf32>
    tpu.vector_store %arg4[%c0_5, %c0_6], %6 {strides = array<i32>} : memref<680x128xf32, #tpu.memory_space<vmem>>, vector<680x128xf32>,
    return
  }
  func.func @transform_0(%arg0: i32) -> (i32, i32) {
    %c0_i32 = arith.constant 0 : i32
    %c0_i32_0 = arith.constant 0 : i32
    return %arg0, %c0_i32 : i32, i32
  }
  func.func @transform_1(%arg0: i32) -> (i32, i32) {
    %c0_i32 = arith.constant 0 : i32
    %c0_i32_0 = arith.constant 0 : i32
    %c0_i32_1 = arith.constant 0 : i32
    return %c0_i32, %c0_i32_0 : i32, i32
  }
  func.func @transform_2(%arg0: i32) -> (i32, i32) {
    %c0_i32 = arith.constant 0 : i32
    %c0_i32_0 = arith.constant 0 : i32
    %c0_i32_1 = arith.constant 0 : i32
    return %c0_i32, %c0_i32_0 : i32, i32
  }
  func.func @transform_3(%arg0: i32) -> (i32, i32) {
    %c0_i32 = arith.constant 0 : i32
    %c0_i32_0 = arith.constant 0 : i32
    return %arg0, %c0_i32 : i32, i32
  }
}

</mosaic_0001>

<bundles_post_ra>
// kernel: model_tanh_forward.1
= control target key start
LH: loop header
LB: loop body
LE: loop exit
PB: predicated region body
PF: predicated region fallthrough
CT: control target
= control target key end

     0   :  { %s1648_s12 = smov 0   ;;  %s2156_s0 = inlined_call_operand.vmem [shape: f32[1360,128], index: 0, kind: input, shape index: {}]   ;;  %s2157_s1 = inlined_call_operand.vmem [shape: f32[128,128], index: 1, kind: input, shape index: {}]   ;;  %s2158_s2 = inlined_call_operand.vmem [shape: f32[1,128], index: 2, kind: input, shape index: {}]   ;;  %s2159_s3 = inlined_call_operand.vmem [shape: f32[1360,128], index: 3, kind: output, shape index: {}]  }
   0x1 LB: > { %s998_s13 = sadd.s32 4294967295, %s1623_s12   ;;  %p1002_p0 = scmp.ge.s32.totalorder %s1623_s12, 1  ;;  %s1623_s12 = sphi %s1648_s12, %s13_s12  }
   0x2   : > { %p138_p1 = scmp.lt.s32.totalorder %s1623_s12, 3 }
   0x4   : > { %p139_p2 = pnand %p1002_p0, %p138_p1 }
   0x5   : > { %v259_v0 = vld [vmem:[%s2157_s1] sm:$0xff] (!%p139_p2)  ;;  %v260_v1 = vld [vmem:[%s2157_s1 + $0x8] sm:$0xff] (!%p139_p2)  ;;  %v261_v2 = vld [vmem:[%s2157_s1 + $0x10] sm:$0xff] (!%p139_p2)  ;;  %v1625_v3 = vmov (!%p139_p2), 0.0|0.0   ;;  %vm1626_vm0 = vmmov (!%p139_p2), 0   ;;  %v1627_v6 = vmov (!%p139_p2), 0.0  }
   0x6   : > { %142 = sbr.rel (%p139_p2) target bundleno = 433 (0x1b1), region = 32  ;;  %1396 = vmatprep.subr.bf16.mxu0 (!%p139_p2), %v1625_v3  ;;  %v1397_v4 = vpack.c.bf16 (!%p139_p2), %v260_v1, %v259_v0  ;;  %1420 = vmatprep.subr.bf16.mxu1 (!%p139_p2), %v1625_v3  ;;  %v262_v5 = vld [vmem:[%s2157_s1 + $0x18] sm:$0xff] (!%p139_p2)  ;;  %v263_v8 = vld [vmem:[%s2157_s1 + $0x20] sm:$0xff] (!%p139_p2)  ;;  %v264_v9 = vld [vmem:[%s2157_s1 + $0x28] sm:$0xff] (!%p139_p2) }
   0x7   : > { %1141 = vmatprep.mubr.msk.f32.mxu0 (!%p139_p2), %vm1626_vm0, %v1627_v6  ;;  %1270 = vmatprep.mubr.msk.f32.mxu1 (!%p139_p2), %vm1626_vm0, %v1627_v6  ;;  %v1400_v7 = vpack.c.bf16 (!%p139_p2), %v262_v5, %v261_v2  ;;  %v1403_v10 = vpack.c.bf16 (!%p139_p2), %v264_v9, %v263_v8  ;;  %v265_v11 = vld [vmem:[%s2157_s1 + $0x30] sm:$0xff] (!%p139_p2)  ;;  %v266_v12 = vld [vmem:[%s2157_s1 + $0x38] sm:$0xff] (!%p139_p2)  ;;  %v267_v14 = vld [vmem:[%s2157_s1 + $0x40] sm:$0xff] (!%p139_p2)  ;;  %s162_s7 = smul.u32 (!%p139_p2), 85, %s998_s13 }
   0x8   : > { %1398 = vmatpush3.bf16.msra.mxu0 (!%p139_p2), %v1397_v4  ;;  %1428 = vmatpush3.bf16.msra.mxu1 (!%p139_p2), %v1397_v4  ;;  %v1406_v13 = vpack.c.bf16 (!%p139_p2), %v266_v12, %v265_v11  ;;  %v268_v15 = vld [vmem:[%s2157_s1 + $0x48] sm:$0xff] (!%p139_p2)  ;;  %v269_v17 = vld [vmem:[%s2157_s1 + $0x50] sm:$0xff] (!%p139_p2)  ;;  %v270_v18 = vld [vmem:[%s2157_s1 + $0x58] sm:$0xff] (!%p139_p2) }
   0x9   : > { %1399 = vmatprep.subr.bf16.mxu0 (!%p139_p2), %v1625_v3  ;;  %1421 = vmatprep.subr.bf16.mxu1 (!%p139_p2), %v1625_v3  ;;  %v1409_v16 = vpack.c.bf16 (!%p139_p2), %v268_v15, %v267_v14  ;;  %p163_p3 = scmp.lt.s32.totalorder (!%p139_p2), %s162_s7, 169  ;;  %v1412_v19 = vpack.c.bf16 (!%p139_p2), %v270_v18, %v269_v17  ;;  %v271_v20 = vld [vmem:[%s2157_s1 + $0x60] sm:$0xff] (!%p139_p2)  ;;  %v272_v21 = vld [vmem:[%s2157_s1 + $0x68] sm:$0xff] (!%p139_p2)  ;;  %v273_v23 = vld [vmem:[%s2157_s1 + $0x70] sm:$0xff] (!%p139_p2) }
   0xa   : > { %v1415_v22 = vpack.c.bf16 (!%p139_p2), %v272_v21, %v271_v20  ;;  %v274_v24 = vld [vmem:[%s2157_s1 + $0x78] sm:$0xff] (!%p139_p2) }
   0xb   : > { %v1418_v25 = vpack.c.bf16 (!%p139_p2), %v274_v24, %v273_v23 }
   0xc   : > { %1401 = vmatpush3.bf16.msra.mxu0 (!%p139_p2), %v1400_v7  ;;  %1429 = vmatpush3.bf16.msra.mxu1 (!%p139_p2), %v1400_v7 }
   0xd   : > { %1402 = vmatprep.subr.bf16.mxu0 %v1625_v3  ;;  %1422 = vmatprep.subr.bf16.mxu1 %v1625_v3  ;;  %s2161_s7 = smov (!%p163_p3, %s162_s7), 169 }
   0xe   : > { %s1003_s21 = sshll.u32 %s2161_s7, 3 }
   0xf   : > { %s1718_s24 = scalar_lea.vmem %s2156_s0, %s1003_s21  ;;  %s1987_s29 = scalar_lea.vmem %s2159_s3, %s1003_s21 }
  0x10   : > { %1404 = vmatpush3.bf16.msra.mxu0 %v1403_v10  ;;  %1430 = vmatpush3.bf16.msra.mxu1 %v1403_v10  ;;  %v174_v26 = vld [vmem:[%s1718_s24] sm:$0xff]  ;;  %v217_v27 = vld [vmem:[%s1718_s24 + $0x158] sm:$0xff]  ;;  %v175_v28 = vld [vmem:[%s1718_s24 + $0x8] sm:$0xff] }
  0x11   : > { %1405 = vmatprep.subr.bf16.mxu0 %v1625_v3  ;;  %1423 = vmatprep.subr.bf16.mxu1 %v1625_v3  ;;  %v218_v29 = vld [vmem:[%s1718_s24 + $0x160] sm:$0xff]  ;;  %v176_v30 = vld [vmem:[%s1718_s24 + $0x10] sm:$0xff]  ;;  %v219_v31 = vld [vmem:[%s1718_s24 + $0x168] sm:$0xff] }
  0x12   : > { %v177_v32 = vld [vmem:[%s1718_s24 + $0x18] sm:$0xff]  ;;  %v220_v33 = vld [vmem:[%s1718_s24 + $0x170] sm:$0xff]  ;;  %v178_v34 = vld [vmem:[%s1718_s24 + $0x20] sm:$0xff] }
  0x13   : > { %v221_v35 = vld [vmem:[%s1718_s24 + $0x178] sm:$0xff]  ;;  %v179_v36 = vld [vmem:[%s1718_s24 + $0x28] sm:$0xff]  ;;  %v222_v37 = vld [vmem:[%s1718_s24 + $0x180] sm:$0xff] }
  0x14   : > { %1407 = vmatpush3.bf16.msra.mxu0 %v1406_v13  ;;  %1431 = vmatpush3.bf16.msra.mxu1 %v1406_v13  ;;  %v180_v38 = vld [vmem:[%s1718_s24 + $0x30] sm:$0xff]  ;;  %v223_v39 = vld [vmem:[%s1718_s24 + $0x188] sm:$0xff]  ;;  %v181_v40 = vld [vmem:[%s1718_s24 + $0x38] sm:$0xff] }
  0x15   : > { %1408 = vmatprep.subr.bf16.mxu0 %v1625_v3  ;;  %1424 = vmatprep.subr.bf16.mxu1 %v1625_v3  ;;  %v224_v41 = vld [vmem:[%s1718_s24 + $0x190] sm:$0xff]  ;;  %v182_v42 = vld [vmem:[%s1718_s24 + $0x40] sm:$0xff]  ;;  %v225_v43 = vld [vmem:[%s1718_s24 + $0x198] sm:$0xff] }
  0x16   : > { %v183_v44 = vld [vmem:[%s1718_s24 + $0x48] sm:$0xff]  ;;  %v226_v45 = vld [vmem:[%s1718_s24 + $0x1a0] sm:$0xff]  ;;  %v184_v46 = vld [vmem:[%s1718_s24 + $0x50] sm:$0xff] }
  0x17   : > { %v227_v47 = vld [vmem:[%s1718_s24 + $0x1a8] sm:$0xff]  ;;  %v185_v48 = vld [vmem:[%s1718_s24 + $0x58] sm:$0xff]  ;;  %v228_v49 = vld [vmem:[%s1718_s24 + $0x1b0] sm:$0xff] }
  0x18   : > { %1410 = vmatpush3.bf16.msra.mxu0 %v1409_v16  ;;  %1432 = vmatpush3.bf16.msra.mxu1 %v1409_v16  ;;  %v186_v50 = vld [vmem:[%s1718_s24 + $0x60] sm:$0xff]  ;;  %v229_v51 = vld [vmem:[%s1718_s24 + $0x1b8] sm:$0xff]  ;;  %v187_v52 = vld [vmem:[%s1718_s24 + $0x68] sm:$0xff] }
  0x19   : > { %1411 = vmatprep.subr.bf16.mxu0 %v1625_v3  ;;  %1425 = vmatprep.subr.bf16.mxu1 %v1625_v3  ;;  %v230_v53 = vld [vmem:[%s1718_s24 + $0x1c0] sm:$0xff]  ;;  %v188_v54 = vld [vmem:[%s1718_s24 + $0x70] sm:$0xff]  ;;  %v231_v55 = vld [vmem:[%s1718_s24 + $0x1c8] sm:$0xff] }
  0x1a   : > { %v189_v56 = vld [vmem:[%s1718_s24 + $0x78] sm:$0xff]  ;;  %v232_v57 = vld [vmem:[%s1718_s24 + $0x1d0] sm:$0xff]  ;;  %v190_v58 = vld [vmem:[%s1718_s24 + $0x80] sm:$0xff] }
  0x1b   : > { %v233_v59 = vld [vmem:[%s1718_s24 + $0x1d8] sm:$0xff]  ;;  %v191_v60 = vld [vmem:[%s1718_s24 + $0x88] sm:$0xff]  ;;  %v234_v61 = vld [vmem:[%s1718_s24 + $0x1e0] sm:$0xff] }
  0x1c   : > { %1413 = vmatpush3.bf16.msra.mxu0 %v1412_v19  ;;  %1433 = vmatpush3.bf16.msra.mxu1 %v1412_v19  ;;  %v192_v62 = vld [vmem:[%s1718_s24 + $0x90] sm:$0xff]  ;;  %v235_v63 = vld [vmem:[%s1718_s24 + $0x1e8] sm:$0xff]  ;;  %v193_v0 = vld [vmem:[%s1718_s24 + $0x98] sm:$0xff] }
  0x1d   : > { %1414 = vmatprep.subr.bf16.mxu0 %v1625_v3  ;;  %1426 = vmatprep.subr.bf16.mxu1 %v1625_v3  ;;  %v236_v1 = vld [vmem:[%s1718_s24 + $0x1f0] sm:$0xff]  ;;  %v194_v2 = vld [vmem:[%s1718_s24 + $0xa0] sm:$0xff]  ;;  %v195_v4 = vld [vmem:[%s1718_s24 + $0xa8] sm:$0xff] }
  0x1e   : > { %v238_v5 = vld [vmem:[%s1718_s24 + $0x200] sm:$0xff]  ;;  %v196_v7 = vld [vmem:[%s1718_s24 + $0xb0] sm:$0xff]  ;;  %v239_v8 = vld [vmem:[%s1718_s24 + $0x208] sm:$0xff] }
  0x1f   : > { %v197_v9 = vld [vmem:[%s1718_s24 + $0xb8] sm:$0xff]  ;;  %v240_v10 = vld [vmem:[%s1718_s24 + $0x210] sm:$0xff]  ;;  %v198_v11 = vld [vmem:[%s1718_s24 + $0xc0] sm:$0xff] }
  0x20   : > { %1416 = vmatpush3.bf16.msra.mxu0 %v1415_v22  ;;  %1434 = vmatpush3.bf16.msra.mxu1 %v1415_v22  ;;  %v241_v12 = vld [vmem:[%s1718_s24 + $0x218] sm:$0xff]  ;;  %v199_v13 = vld [vmem:[%s1718_s24 + $0xc8] sm:$0xff]  ;;  %v242_v14 = vld [vmem:[%s1718_s24 + $0x220] sm:$0xff] }
  0x21   : > { %1417 = vmatprep.subr.bf16.mxu0 %v1625_v3  ;;  %1427 = vmatprep.subr.bf16.mxu1 %v1625_v3  ;;  %v237_v3 = vld [vmem:[%s1718_s24 + $0x1f8] sm:$0xff]  ;;  %v200_v15 = vld [vmem:[%s1718_s24 + $0xd0] sm:$0xff]  ;;  %v243_v16 = vld [vmem:[%s1718_s24 + $0x228] sm:$0xff] }
  0x22   : > { %v201_v17 = vld [vmem:[%s1718_s24 + $0xd8] sm:$0xff]  ;;  %v244_v18 = vld [vmem:[%s1718_s24 + $0x230] sm:$0xff]  ;;  %v202_v19 = vld [vmem:[%s1718_s24 + $0xe0] sm:$0xff] }
  0x23   : > { %v245_v20 = vld [vmem:[%s1718_s24 + $0x238] sm:$0xff]  ;;  %v203_v21 = vld [vmem:[%s1718_s24 + $0xe8] sm:$0xff]  ;;  %v246_v22 = vld [vmem:[%s1718_s24 + $0x240] sm:$0xff] }
  0x24   : > { %1419 = vmatpush3.bf16.msra.mxu0 %v1418_v25  ;;  %1435 = vmatpush3.bf16.msra.mxu1 %v1418_v25  ;;  %v204_v23 = vld [vmem:[%s1718_s24 + $0xf0] sm:$0xff]  ;;  %v247_v24 = vld [vmem:[%s1718_s24 + $0x248] sm:$0xff]  ;;  %v205_v25 = vld [vmem:[%s1718_s24 + $0xf8] sm:$0xff] }
  0x27   : > { %1142 = vmatmul.mubr.f32.vlgmr.msra.gmra.mrb[0].mxu0 %v174_v26  ;;  %1271 = vmatmul.mubr.f32.vlgmr.msra.gmra.mrb[0].mxu1 %v217_v27  ;;  %v248_v26 = vld [vmem:[%s1718_s24 + $0x250] sm:$0xff]  ;;  %v206_v27 = vld [vmem:[%s1718_s24 + $0x100] sm:$0xff] }
  0x28   : > { %1144 = vmatprep.mubr.msk.f32.mxu0 %vm1626_vm0, %v1627_v6  ;;  %1273 = vmatprep.mubr.msk.f32.mxu1 %vm1626_vm0, %v1627_v6 }
  0x2b   : > { %1145 = vmatmul.mubr.f32.gmra.mrb[2].mxu0 %v175_v28  ;;  %1274 = vmatmul.mubr.f32.gmra.mrb[2].mxu1 %v218_v29  ;;  %v249_v28 = vld [vmem:[%s1718_s24 + $0x258] sm:$0xff]  ;;  %v207_v29 = vld [vmem:[%s1718_s24 + $0x108] sm:$0xff] }
  0x2c   : > { %1147 = vmatprep.mubr.msk.f32.mxu0 %vm1626_vm0, %v1627_v6  ;;  %1276 = vmatprep.mubr.msk.f32.mxu1 %vm1626_vm0, %v1627_v6 }
  0x2f   : > { %1148 = vmatmul.mubr.f32.gmra.mrb[4].mxu0 %v176_v30  ;;  %1277 = vmatmul.mubr.f32.gmra.mrb[4].mxu1 %v219_v31  ;;  %v250_v30 = vld [vmem:[%s1718_s24 + $0x260] sm:$0xff]  ;;  %v208_v31 = vld [vmem:[%s1718_s24 + $0x110] sm:$0xff] }
  0x30   : > { %1150 = vmatprep.mubr.msk.f32.mxu0 %vm1626_vm0, %v1627_v6  ;;  %1279 = vmatprep.mubr.msk.f32.mxu1 %vm1626_vm0, %v1627_v6 }
  0x33   : > { %1151 = vmatmul.mubr.f32.gmra.mrb[6].mxu0 %v177_v32  ;;  %1280 = vmatmul.mubr.f32.gmra.mrb[6].mxu1 %v220_v33  ;;  %v251_v32 = vld [vmem:[%s1718_s24 + $0x268] sm:$0xff]  ;;  %v209_v33 = vld [vmem:[%s1718_s24 + $0x118] sm:$0xff] }
  0x34   : > { %1153 = vmatprep.mubr.msk.f32.mxu0 %vm1626_vm0, %v1627_v6  ;;  %1282 = vmatprep.mubr.msk.f32.mxu1 %vm1626_vm0, %v1627_v6 }
  0x37   : > { %1154 = vmatmul.mubr.f32.gmra.mrb[8].mxu0 %v178_v34  ;;  %1283 = vmatmul.mubr.f32.gmra.mrb[8].mxu1 %v221_v35  ;;  %v252_v34 = vld [vmem:[%s1718_s24 + $0x270] sm:$0xff]  ;;  %v210_v35 = vld [vmem:[%s1718_s24 + $0x120] sm:$0xff] }
  0x38   : > { %1156 = vmatprep.mubr.msk.f32.mxu0 %vm1626_vm0, %v1627_v6  ;;  %1285 = vmatprep.mubr.msk.f32.mxu1 %vm1626_vm0, %v1627_v6 }
  0x3b   : > { %1157 = vmatmul.mubr.f32.gmra.mrb[10].mxu0 %v179_v36  ;;  %1286 = vmatmul.mubr.f32.gmra.mrb[10].mxu1 %v222_v37  ;;  %v253_v36 = vld [vmem:[%s1718_s24 + $0x278] sm:$0xff]  ;;  %v211_v37 = vld [vmem:[%s1718_s24 + $0x128] sm:$0xff] }
  0x3c   : > { %1159 = vmatprep.mubr.msk.f32.mxu0 %vm1626_vm0, %v1627_v6  ;;  %1288 = vmatprep.mubr.msk.f32.mxu1 %vm1626_vm0, %v1627_v6 }
  0x3f   : > { %1160 = vmatmul.mubr.f32.gmra.mrb[12].mxu0 %v180_v38  ;;  %1289 = vmatmul.mubr.f32.gmra.mrb[12].mxu1 %v223_v39  ;;  %v254_v38 = vld [vmem:[%s1718_s24 + $0x280] sm:$0xff]  ;;  %v212_v39 = vld [vmem:[%s1718_s24 + $0x130] sm:$0xff] }
  0x40   : > { %1162 = vmatprep.mubr.msk.f32.mxu0 %vm1626_vm0, %v1627_v6  ;;  %1291 = vmatprep.mubr.msk.f32.mxu1 %vm1626_vm0, %v1627_v6 }
  0x43   : > { %1163 = vmatmul.mubr.f32.gmra.mrb[14].mxu0 %v181_v40  ;;  %1292 = vmatmul.mubr.f32.gmra.mrb[14].mxu1 %v224_v41  ;;  %v255_v40 = vld [vmem:[%s1718_s24 + $0x288] sm:$0xff]  ;;  %v213_v41 = vld [vmem:[%s1718_s24 + $0x138] sm:$0xff] }
  0x44   : > { %1165 = vmatprep.mubr.msk.f32.mxu0 %vm1626_vm0, %v1627_v6  ;;  %1294 = vmatprep.mubr.msk.f32.mxu1 %vm1626_vm0, %v1627_v6 }
  0x47   : > { %1166 = vmatmul.mubr.f32.gmra.mrb[16].mxu0 %v182_v42  ;;  %1295 = vmatmul.mubr.f32.gmra.mrb[16].mxu1 %v225_v43  ;;  %v256_v42 = vld [vmem:[%s1718_s24 + $0x290] sm:$0xff]  ;;  %v214_v43 = vld [vmem:[%s1718_s24 + $0x140] sm:$0xff] }
  0x48   : > { %1168 = vmatprep.mubr.msk.f32.mxu0 %vm1626_vm0, %v1627_v6  ;;  %1297 = vmatprep.mubr.msk.f32.mxu1 %vm1626_vm0, %v1627_v6 }
  0x4b   : > { %1169 = vmatmul.mubr.f32.gmra.mrb[18].mxu0 %v183_v44  ;;  %1298 = vmatmul.mubr.f32.gmra.mrb[18].mxu1 %v226_v45  ;;  %v257_v44 = vld [vmem:[%s1718_s24 + $0x298] sm:$0xff]  ;;  %v215_v45 = vld [vmem:[%s1718_s24 + $0x148] sm:$0xff] }
  0x4c   : > { %1171 = vmatprep.mubr.msk.f32.mxu0 %vm1626_vm0, %v1627_v6  ;;  %1300 = vmatprep.mubr.msk.f32.mxu1 %vm1626_vm0, %v1627_v6 }
  0x4f   : > { %1172 = vmatmul.mubr.f32.gmra.mrb[20].mxu0 %v184_v46  ;;  %1301 = vmatmul.mubr.f32.gmra.mrb[20].mxu1 %v227_v47  ;;  %v258_v46 = vld [vmem:[%s1718_s24 + $0x2a0] sm:$0xff]  ;;  %v216_v47 = vld [vmem:[%s1718_s24 + $0x150] sm:$0xff] }
  0x50   : > { %1174 = vmatprep.mubr.msk.f32.mxu0 %vm1626_vm0, %v1627_v6  ;;  %1303 = vmatprep.mubr.msk.f32.mxu1 %vm1626_vm0, %v1627_v6 }
  0x53   : > { %1175 = vmatmul.mubr.f32.gmra.mrb[22].mxu0 %v185_v48  ;;  %1304 = vmatmul.mubr.f32.gmra.mrb[22].mxu1 %v228_v49  ;;  %v1974_v48 = vld [vmem:[%s2158_s2] ss:$0 sm:$0xff] }
  0x54   : > { %1177 = vmatprep.mubr.msk.f32.mxu0 %vm1626_vm0, %v1627_v6  ;;  %1306 = vmatprep.mubr.msk.f32.mxu1 %vm1626_vm0, %v1627_v6 }
  0x57   : > { %1178 = vmatmul.mubr.f32.gmra.mrb[24].mxu0 %v186_v50  ;;  %1307 = vmatmul.mubr.f32.gmra.mrb[24].mxu1 %v229_v51 }
  0x58   : > { %1180 = vmatprep.mubr.msk.f32.mxu0 %vm1626_vm0, %v1627_v6  ;;  %1309 = vmatprep.mubr.msk.f32.mxu1 %vm1626_vm0, %v1627_v6 }
  0x5b   : > { %1181 = vmatmul.mubr.f32.gmra.mrb[26].mxu0 %v187_v52  ;;  %1310 = vmatmul.mubr.f32.gmra.mrb[26].mxu1 %v230_v53 }
  0x5c   : > { %1183 = vmatprep.mubr.msk.f32.mxu0 %vm1626_vm0, %v1627_v6  ;;  %1312 = vmatprep.mubr.msk.f32.mxu1 %vm1626_vm0, %v1627_v6 }
  0x5f   : > { %1184 = vmatmul.mubr.f32.gmra.mrb[28].mxu0 %v188_v54  ;;  %1313 = vmatmul.mubr.f32.gmra.mrb[28].mxu1 %v231_v55 }
  0x60   : > { %1186 = vmatprep.mubr.msk.f32.mxu0 %vm1626_vm0, %v1627_v6  ;;  %1315 = vmatprep.mubr.msk.f32.mxu1 %vm1626_vm0, %v1627_v6 }
  0x63   : > { %1187 = vmatmul.mubr.f32.gmra.mrb[30].mxu0 %v189_v56  ;;  %1316 = vmatmul.mubr.f32.gmra.mrb[30].mxu1 %v232_v57 }
  0x64   : > { %1189 = vmatprep.mubr.msk.f32.mxu0 %vm1626_vm0, %v1627_v6  ;;  %1318 = vmatprep.mubr.msk.f32.mxu1 %vm1626_vm0, %v1627_v6 }
  0x67   : > { %1190 = vmatmul.mubr.f32.gmra.mrb[32].mxu0 %v190_v58  ;;  %1319 = vmatmul.mubr.f32.gmra.mrb[32].mxu1 %v233_v59 }
  0x68   : > { %1192 = vmatprep.mubr.msk.f32.mxu0 %vm1626_vm0, %v1627_v6  ;;  %1321 = vmatprep.mubr.msk.f32.mxu1 %vm1626_vm0, %v1627_v6 }
  0x6b   : > { %1193 = vmatmul.mubr.f32.gmra.mrb[34].mxu0 %v191_v60  ;;  %1322 = vmatmul.mubr.f32.gmra.mrb[34].mxu1 %v234_v61 }
  0x6c   : > { %1195 = vmatprep.mubr.msk.f32.mxu0 %vm1626_vm0, %v1627_v6  ;;  %1324 = vmatprep.mubr.msk.f32.mxu1 %vm1626_vm0, %v1627_v6 }
  0x6f   : > { %1196 = vmatmul.mubr.f32.gmra.mrb[36].mxu0 %v192_v62  ;;  %1325 = vmatmul.mubr.f32.gmra.mrb[36].mxu1 %v235_v63 }
  0x70   : > { %1198 = vmatprep.mubr.msk.f32.mxu0 %vm1626_vm0, %v1627_v6  ;;  %1327 = vmatprep.mubr.msk.f32.mxu1 %vm1626_vm0, %v1627_v6 }
  0x73   : > { %1199 = vmatmul.mubr.f32.gmra.mrb[38].mxu0 %v193_v0  ;;  %1328 = vmatmul.mubr.f32.gmra.mrb[38].mxu1 %v236_v1 }
  0x74   : > { %1201 = vmatprep.mubr.msk.f32.mxu0 %vm1626_vm0, %v1627_v6  ;;  %1330 = vmatprep.mubr.msk.f32.mxu1 %vm1626_vm0, %v1627_v6 }
  0x77   : > { %1202 = vmatmul.mubr.f32.gmra.mrb[40].mxu0 %v194_v2  ;;  %1331 = vmatmul.mubr.f32.gmra.mrb[40].mxu1 %v237_v3 }
  0x78   : > { %1204 = vmatprep.mubr.msk.f32.mxu0 %vm1626_vm0, %v1627_v6  ;;  %1333 = vmatprep.mubr.msk.f32.mxu1 %vm1626_vm0, %v1627_v6 }
  0x7b   : > { %1205 = vmatmul.mubr.f32.gmra.mrb[42].mxu0 %v195_v4  ;;  %1334 = vmatmul.mubr.f32.gmra.mrb[42].mxu1 %v238_v5 }
  0x7c   : > { %1207 = vmatprep.mubr.msk.f32.mxu0 %vm1626_vm0, %v1627_v6  ;;  %1336 = vmatprep.mubr.msk.f32.mxu1 %vm1626_vm0, %v1627_v6 }
  0x7f   : > { %1208 = vmatmul.mubr.f32.gmra.mrb[44].mxu0 %v196_v7  ;;  %1337 = vmatmul.mubr.f32.gmra.mrb[44].mxu1 %v239_v8 }
  0x80   : > { %1210 = vmatprep.mubr.msk.f32.mxu0 %vm1626_vm0, %v1627_v6  ;;  %1339 = vmatprep.mubr.msk.f32.mxu1 %vm1626_vm0, %v1627_v6 }
  0x83   : > { %1211 = vmatmul.mubr.f32.gmra.mrb[46].mxu0 %v197_v9  ;;  %1340 = vmatmul.mubr.f32.gmra.mrb[46].mxu1 %v240_v10 }
  0x84   : > { %1213 = vmatprep.mubr.msk.f32.mxu0 %vm1626_vm0, %v1627_v6  ;;  %1342 = vmatprep.mubr.msk.f32.mxu1 %vm1626_vm0, %v1627_v6 }
  0x87   : > { %1214 = vmatmul.mubr.f32.gmra.mrb[48].mxu0 %v198_v11  ;;  %1343 = vmatmul.mubr.f32.gmra.mrb[48].mxu1 %v241_v12 }
  0x88   : > { %1216 = vmatprep.mubr.msk.f32.mxu0 %vm1626_vm0, %v1627_v6  ;;  %1345 = vmatprep.mubr.msk.f32.mxu1 %vm1626_vm0, %v1627_v6 }
  0x8b   : > { %1217 = vmatmul.mubr.f32.gmra.mrb[50].mxu0 %v199_v13  ;;  %1346 = vmatmul.mubr.f32.gmra.mrb[50].mxu1 %v242_v14 }
  0x8c   : > { %1219 = vmatprep.mubr.msk.f32.mxu0 %vm1626_vm0, %v1627_v6  ;;  %1348 = vmatprep.mubr.msk.f32.mxu1 %vm1626_vm0, %v1627_v6 }
  0x8f   : > { %1220 = vmatmul.mubr.f32.gmra.mrb[52].mxu0 %v200_v15  ;;  %1349 = vmatmul.mubr.f32.gmra.mrb[52].mxu1 %v243_v16 }
  0x90   : > { %1222 = vmatprep.mubr.msk.f32.mxu0 %vm1626_vm0, %v1627_v6  ;;  %1351 = vmatprep.mubr.msk.f32.mxu1 %vm1626_vm0, %v1627_v6 }
  0x93   : > { %1223 = vmatmul.mubr.f32.gmra.mrb[54].mxu0 %v201_v17  ;;  %1352 = vmatmul.mubr.f32.gmra.mrb[54].mxu1 %v244_v18 }
  0x94   : > { %1225 = vmatprep.mubr.msk.f32.mxu0 %vm1626_vm0, %v1627_v6  ;;  %1354 = vmatprep.mubr.msk.f32.mxu1 %vm1626_vm0, %v1627_v6 }
  0x97   : > { %1226 = vmatmul.mubr.f32.gmra.mrb[56].mxu0 %v202_v19  ;;  %1355 = vmatmul.mubr.f32.gmra.mrb[56].mxu1 %v245_v20 }
  0x98   : > { %1228 = vmatprep.mubr.msk.f32.mxu0 %vm1626_vm0, %v1627_v6  ;;  %1357 = vmatprep.mubr.msk.f32.mxu1 %vm1626_vm0, %v1627_v6 }
  0x9b   : > { %1229 = vmatmul.mubr.f32.gmra.mrb[58].mxu0 %v203_v21  ;;  %1358 = vmatmul.mubr.f32.gmra.mrb[58].mxu1 %v246_v22 }
  0x9c   : > { %1231 = vmatprep.mubr.msk.f32.mxu0 %vm1626_vm0, %v1627_v6  ;;  %1360 = vmatprep.mubr.msk.f32.mxu1 %vm1626_vm0, %v1627_v6 }
  0x9f   : > { %1232 = vmatmul.mubr.f32.gmra.mrb[60].mxu0 %v204_v23  ;;  %1361 = vmatmul.mubr.f32.gmra.mrb[60].mxu1 %v247_v24 }
  0xa0   : > { %1234 = vmatprep.mubr.msk.f32.mxu0 %vm1626_vm0, %v1627_v6  ;;  %1363 = vmatprep.mubr.msk.f32.mxu1 %vm1626_vm0, %v1627_v6 }
  0xa3   : > { %1235 = vmatmul.mubr.f32.gmra.mrb[62].mxu0 %v205_v25  ;;  %1364 = vmatmul.mubr.f32.gmra.mrb[62].mxu1 %v248_v26 }
  0xa4   : > { %1237 = vmatprep.mubr.msk.f32.mxu0 %vm1626_vm0, %v1627_v6  ;;  %1366 = vmatprep.mubr.msk.f32.mxu1 %vm1626_vm0, %v1627_v6 }
  0xa7   : > { %1238 = vmatmul.mubr.f32.gmra.mrb[64].mxu0 %v206_v27  ;;  %1367 = vmatmul.mubr.f32.gmra.mrb[64].mxu1 %v249_v28 }
  0xa8   : > { %1240 = vmatprep.mubr.msk.f32.mxu0 %vm1626_vm0, %v1627_v6  ;;  %1369 = vmatprep.mubr.msk.f32.mxu1 %vm1626_vm0, %v1627_v6 }
  0xab   : > { %1241 = vmatmul.mubr.f32.gmra.mrb[66].mxu0 %v207_v29  ;;  %1370 = vmatmul.mubr.f32.gmra.mrb[66].mxu1 %v250_v30 }
  0xac   : > { %1243 = vmatprep.mubr.msk.f32.mxu0 %vm1626_vm0, %v1627_v6  ;;  %1372 = vmatprep.mubr.msk.f32.mxu1 %vm1626_vm0, %v1627_v6 }
  0xaf   : > { %1244 = vmatmul.mubr.f32.gmra.mrb[68].mxu0 %v208_v31  ;;  %1373 = vmatmul.mubr.f32.gmra.mrb[68].mxu1 %v251_v32 }
  0xb0   : > { %1246 = vmatprep.mubr.msk.f32.mxu0 %vm1626_vm0, %v1627_v6  ;;  %1375 = vmatprep.mubr.msk.f32.mxu1 %vm1626_vm0, %v1627_v6 }
  0xb3   : > { %1247 = vmatmul.mubr.f32.gmra.mrb[70].mxu0 %v209_v33  ;;  %1376 = vmatmul.mubr.f32.gmra.mrb[70].mxu1 %v252_v34 }
  0xb4   : > { %1249 = vmatprep.mubr.msk.f32.mxu0 %vm1626_vm0, %v1627_v6  ;;  %1378 = vmatprep.mubr.msk.f32.mxu1 %vm1626_vm0, %v1627_v6 }
  0xb7   : > { %1250 = vmatmul.mubr.f32.gmra.mrb[72].mxu0 %v210_v35  ;;  %1379 = vmatmul.mubr.f32.gmra.mrb[72].mxu1 %v253_v36 }
  0xb8   : > { %1252 = vmatprep.mubr.msk.f32.mxu0 %vm1626_vm0, %v1627_v6  ;;  %1381 = vmatprep.mubr.msk.f32.mxu1 %vm1626_vm0, %v1627_v6 }
  0xbb   : > { %1253 = vmatmul.mubr.f32.gmra.mrb[74].mxu0 %v211_v37  ;;  %1382 = vmatmul.mubr.f32.gmra.mrb[74].mxu1 %v254_v38 }
  0xbc   : > { %1255 = vmatprep.mubr.msk.f32.mxu0 %vm1626_vm0, %v1627_v6  ;;  %1384 = vmatprep.mubr.msk.f32.mxu1 %vm1626_vm0, %v1627_v6 }
  0xbf   : > { %1256 = vmatmul.mubr.f32.gmra.mrb[76].mxu0 %v212_v39  ;;  %1385 = vmatmul.mubr.f32.gmra.mrb[76].mxu1 %v255_v40 }
  0xc0   : > { %1258 = vmatprep.mubr.msk.f32.mxu0 %vm1626_vm0, %v1627_v6  ;;  %1387 = vmatprep.mubr.msk.f32.mxu1 %vm1626_vm0, %v1627_v6 }
  0xc3   : > { %1259 = vmatmul.mubr.f32.gmra.mrb[78].mxu0 %v213_v41  ;;  %1388 = vmatmul.mubr.f32.gmra.mrb[78].mxu1 %v256_v42 }
  0xc4   : > { %1261 = vmatprep.mubr.msk.f32.mxu0 %vm1626_vm0, %v1627_v6  ;;  %1390 = vmatprep.mubr.msk.f32.mxu1 %vm1626_vm0, %v1627_v6 }
  0xc7   : > { %1262 = vmatmul.mubr.f32.gmra.mrb[80].mxu0 %v214_v43  ;;  %1391 = vmatmul.mubr.f32.gmra.mrb[80].mxu1 %v257_v44 }
  0xc8   : > { %1264 = vmatprep.mubr.msk.f32.mxu0 %vm1626_vm0, %v1627_v6  ;;  %1393 = vmatprep.mubr.msk.f32.mxu1 %vm1626_vm0, %v1627_v6 }
  0xcb   : > { %1265 = vmatmul.mubr.f32.gmra.mrb[82].mxu0 %v215_v45  ;;  %1394 = vmatmul.mubr.f32.gmra.mrb[82].mxu1 %v258_v46 }
  0xcc   : > { %1267 = vmatprep.mubr.msk.f32.mxu0 %vm1626_vm0, %v1627_v6 }
  0xcf   : > { %1268 = vmatmul.mubr.f32.gmra.mrb[84].mxu0 %v216_v47 }
  0xfa   : > { %v348_v49 = vpop.f32.mrb[0].mxu0  ;;  %v563_v50 = vpop.f32.mrb[0].mxu1 }
  0xfb   : > { %v349_v51 = vadd.f32 %v1974_v48, %v348_v49  ;;  %v1143_v52 = vpop.f32.mrb[1].mxu0  ;;  %v564_v53 = vadd.f32 %v1974_v48, %v563_v50  ;;  %v1272_v54 = vpop.f32.mrb[1].mxu1 }
  0xfd   : > { %1447 = vtanh.f32 %v349_v51 }
  0xfe   : > { %1449 = vtanh.f32 %v564_v53  ;;  %v353_v55 = vpop.f32.mrb[2].mxu0  ;;  %v568_v6 = vpop.f32.mrb[2].mxu1 }
  0xff   : > { %v354_v56 = vadd.f32 %v1974_v48, %v353_v55  ;;  %v1146_v57 = vpop.f32.mrb[3].mxu0  ;;  %v569_v58 = vadd.f32 %v1974_v48, %v568_v6  ;;  %v1275_v59 = vpop.f32.mrb[3].mxu1 }
 0x101   : > { %1451 = vtanh.f32 %v354_v56 }
 0x102   : > { %1453 = vtanh.f32 %v569_v58  ;;  %v358_v60 = vpop.f32.mrb[4].mxu0  ;;  %v573_v61 = vpop.f32.mrb[4].mxu1 }
 0x103   : > { %v359_v62 = vadd.f32 %v1974_v48, %v358_v60  ;;  %v1149_v63 = vpop.f32.mrb[5].mxu0  ;;  %v574_v0 = vadd.f32 %v1974_v48, %v573_v61  ;;  %v1278_v1 = vpop.f32.mrb[5].mxu1 }
 0x105   : > { %1455 = vtanh.f32 %v359_v62 }
 0x106   : > { %1457 = vtanh.f32 %v574_v0  ;;  %v363_v2 = vpop.f32.mrb[6].mxu0  ;;  %v578_v3 = vpop.f32.mrb[6].mxu1 }
 0x107   : > { %v1448_v4 = vpop.eup %1447  ;;  %v364_v5 = vadd.f32 %v1974_v48, %v363_v2  ;;  %v1152_v7 = vpop.f32.mrb[7].mxu0  ;;  %v579_v8 = vadd.f32 %v1974_v48, %v578_v3 }
 0x108   : > { %v1281_v9 = vpop.f32.mrb[7].mxu1  ;;  %v1450_v10 = vpop.eup %1449  ;;  %857 = vst [vmem:[%s1987_s29] sm:$0xff] %v1448_v4 }
 0x109   : > { %900 = vst [vmem:[%s1987_s29 + $0x158] sm:$0xff] %v1450_v10  ;;  %1459 = vtanh.f32 %v364_v5 }
 0x10a   : > { %1461 = vtanh.f32 %v579_v8  ;;  %v368_v11 = vpop.f32.mrb[8].mxu0  ;;  %v583_v12 = vpop.f32.mrb[8].mxu1 }
 0x10b   : > { %v1452_v13 = vpop.eup %1451  ;;  %v369_v14 = vadd.f32 %v1974_v48, %v368_v11  ;;  %v1155_v15 = vpop.f32.mrb[9].mxu0  ;;  %v584_v16 = vadd.f32 %v1974_v48, %v583_v12 }
 0x10c   : > { %v1284_v17 = vpop.f32.mrb[9].mxu1  ;;  %v1454_v18 = vpop.eup %1453  ;;  %858 = vst [vmem:[%s1987_s29 + $0x8] sm:$0xff] %v1452_v13 }
 0x10d   : > { %901 = vst [vmem:[%s1987_s29 + $0x160] sm:$0xff] %v1454_v18  ;;  %1463 = vtanh.f32 %v369_v14 }
 0x10e   : > { %1465 = vtanh.f32 %v584_v16  ;;  %v373_v19 = vpop.f32.mrb[10].mxu0  ;;  %v588_v20 = vpop.f32.mrb[10].mxu1 }
 0x10f   : > { %v1456_v21 = vpop.eup %1455  ;;  %v374_v22 = vadd.f32 %v1974_v48, %v373_v19  ;;  %v1158_v23 = vpop.f32.mrb[11].mxu0  ;;  %v589_v24 = vadd.f32 %v1974_v48, %v588_v20 }
 0x110   : > { %v1287_v25 = vpop.f32.mrb[11].mxu1  ;;  %v1458_v26 = vpop.eup %1457  ;;  %859 = vst [vmem:[%s1987_s29 + $0x10] sm:$0xff] %v1456_v21 }
 0x111   : > { %902 = vst [vmem:[%s1987_s29 + $0x168] sm:$0xff] %v1458_v26  ;;  %1467 = vtanh.f32 %v374_v22 }
 0x112   : > { %1469 = vtanh.f32 %v589_v24  ;;  %v378_v27 = vpop.f32.mrb[12].mxu0  ;;  %v593_v28 = vpop.f32.mrb[12].mxu1 }
 0x113   : > { %v1460_v29 = vpop.eup %1459  ;;  %v379_v30 = vadd.f32 %v1974_v48, %v378_v27  ;;  %v1161_v31 = vpop.f32.mrb[13].mxu0  ;;  %v594_v32 = vadd.f32 %v1974_v48, %v593_v28 }
 0x114   : > { %v1290_v33 = vpop.f32.mrb[13].mxu1  ;;  %v1462_v34 = vpop.eup %1461  ;;  %860 = vst [vmem:[%s1987_s29 + $0x18] sm:$0xff] %v1460_v29 }
 0x115   : > { %903 = vst [vmem:[%s1987_s29 + $0x170] sm:$0xff] %v1462_v34  ;;  %1471 = vtanh.f32 %v379_v30 }
 0x116   : > { %1473 = vtanh.f32 %v594_v32  ;;  %v383_v35 = vpop.f32.mrb[14].mxu0  ;;  %v598_v36 = vpop.f32.mrb[14].mxu1 }
 0x117   : > { %v1464_v37 = vpop.eup %1463  ;;  %v384_v38 = vadd.f32 %v1974_v48, %v383_v35  ;;  %v1164_v39 = vpop.f32.mrb[15].mxu0  ;;  %v599_v40 = vadd.f32 %v1974_v48, %v598_v36 }
 0x118   : > { %v1293_v41 = vpop.f32.mrb[15].mxu1  ;;  %v1466_v42 = vpop.eup %1465  ;;  %861 = vst [vmem:[%s1987_s29 + $0x20] sm:$0xff] %v1464_v37 }
 0x119   : > { %904 = vst [vmem:[%s1987_s29 + $0x178] sm:$0xff] %v1466_v42  ;;  %1475 = vtanh.f32 %v384_v38 }
 0x11a   : > { %1477 = vtanh.f32 %v599_v40  ;;  %v388_v43 = vpop.f32.mrb[16].mxu0  ;;  %v603_v44 = vpop.f32.mrb[16].mxu1 }
 0x11b   : > { %v1468_v45 = vpop.eup %1467  ;;  %v389_v46 = vadd.f32 %v1974_v48, %v388_v43  ;;  %v1167_v47 = vpop.f32.mrb[17].mxu0  ;;  %v604_v49 = vadd.f32 %v1974_v48, %v603_v44 }
 0x11c   : > { %v1296_v50 = vpop.f32.mrb[17].mxu1  ;;  %v1470_v51 = vpop.eup %1469  ;;  %862 = vst [vmem:[%s1987_s29 + $0x28] sm:$0xff] %v1468_v45 }
 0x11d   : > { %905 = vst [vmem:[%s1987_s29 + $0x180] sm:$0xff] %v1470_v51  ;;  %1479 = vtanh.f32 %v389_v46 }
 0x11e   : > { %1481 = vtanh.f32 %v604_v49  ;;  %v393_v52 = vpop.f32.mrb[18].mxu0  ;;  %v608_v53 = vpop.f32.mrb[18].mxu1 }
 0x11f   : > { %v1472_v54 = vpop.eup %1471  ;;  %v394_v55 = vadd.f32 %v1974_v48, %v393_v52  ;;  %v1170_v6 = vpop.f32.mrb[19].mxu0  ;;  %v609_v56 = vadd.f32 %v1974_v48, %v608_v53 }
 0x120   : > { %v1299_v57 = vpop.f32.mrb[19].mxu1  ;;  %v1474_v58 = vpop.eup %1473  ;;  %863 = vst [vmem:[%s1987_s29 + $0x30] sm:$0xff] %v1472_v54 }
 0x121   : > { %906 = vst [vmem:[%s1987_s29 + $0x188] sm:$0xff] %v1474_v58  ;;  %1483 = vtanh.f32 %v394_v55 }
 0x122   : > { %1485 = vtanh.f32 %v609_v56  ;;  %v398_v59 = vpop.f32.mrb[20].mxu0  ;;  %v613_v60 = vpop.f32.mrb[20].mxu1 }
 0x123   : > { %v1476_v61 = vpop.eup %1475  ;;  %v399_v62 = vadd.f32 %v1974_v48, %v398_v59  ;;  %v1173_v63 = vpop.f32.mrb[21].mxu0  ;;  %v614_v0 = vadd.f32 %v1974_v48, %v613_v60 }
 0x124   : > { %v1302_v1 = vpop.f32.mrb[21].mxu1  ;;  %v1478_v2 = vpop.eup %1477  ;;  %864 = vst [vmem:[%s1987_s29 + $0x38] sm:$0xff] %v1476_v61 }
 0x125   : > { %907 = vst [vmem:[%s1987_s29 + $0x190] sm:$0xff] %v1478_v2  ;;  %1487 = vtanh.f32 %v399_v62 }
 0x126   : > { %1489 = vtanh.f32 %v614_v0  ;;  %v403_v3 = vpop.f32.mrb[22].mxu0  ;;  %v618_v4 = vpop.f32.mrb[22].mxu1 }
 0x127   : > { %v1480_v5 = vpop.eup %1479  ;;  %v404_v7 = vadd.f32 %v1974_v48, %v403_v3  ;;  %v1176_v8 = vpop.f32.mrb[23].mxu0  ;;  %v619_v9 = vadd.f32 %v1974_v48, %v618_v4 }
 0x128   : > { %v1305_v10 = vpop.f32.mrb[23].mxu1  ;;  %v1482_v11 = vpop.eup %1481  ;;  %865 = vst [vmem:[%s1987_s29 + $0x40] sm:$0xff] %v1480_v5 }
 0x129   : > { %908 = vst [vmem:[%s1987_s29 + $0x198] sm:$0xff] %v1482_v11  ;;  %1491 = vtanh.f32 %v404_v7 }
 0x12a   : > { %1493 = vtanh.f32 %v619_v9  ;;  %v408_v12 = vpop.f32.mrb[24].mxu0  ;;  %v623_v13 = vpop.f32.mrb[24].mxu1 }
 0x12b   : > { %v1484_v14 = vpop.eup %1483  ;;  %v409_v15 = vadd.f32 %v1974_v48, %v408_v12  ;;  %v1179_v16 = vpop.f32.mrb[25].mxu0  ;;  %v624_v17 = vadd.f32 %v1974_v48, %v623_v13 }
 0x12c   : > { %v1308_v18 = vpop.f32.mrb[25].mxu1  ;;  %v1486_v19 = vpop.eup %1485  ;;  %866 = vst [vmem:[%s1987_s29 + $0x48] sm:$0xff] %v1484_v14 }
 0x12d   : > { %909 = vst [vmem:[%s1987_s29 + $0x1a0] sm:$0xff] %v1486_v19  ;;  %1495 = vtanh.f32 %v409_v15 }
 0x12e   : > { %1497 = vtanh.f32 %v624_v17  ;;  %v413_v20 = vpop.f32.mrb[26].mxu0  ;;  %v628_v21 = vpop.f32.mrb[26].mxu1 }
 0x12f   : > { %v1488_v22 = vpop.eup %1487  ;;  %v414_v23 = vadd.f32 %v1974_v48, %v413_v20  ;;  %v1182_v24 = vpop.f32.mrb[27].mxu0  ;;  %v629_v25 = vadd.f32 %v1974_v48, %v628_v21 }
 0x130   : > { %v1311_v26 = vpop.f32.mrb[27].mxu1  ;;  %v1490_v27 = vpop.eup %1489  ;;  %867 = vst [vmem:[%s1987_s29 + $0x50] sm:$0xff] %v1488_v22 }
 0x131   : > { %910 = vst [vmem:[%s1987_s29 + $0x1a8] sm:$0xff] %v1490_v27  ;;  %1499 = vtanh.f32 %v414_v23 }
 0x132   : > { %1501 = vtanh.f32 %v629_v25  ;;  %v418_v28 = vpop.f32.mrb[28].mxu0  ;;  %v633_v29 = vpop.f32.mrb[28].mxu1 }
 0x133   : > { %v1492_v30 = vpop.eup %1491  ;;  %v419_v31 = vadd.f32 %v1974_v48, %v418_v28  ;;  %v1185_v32 = vpop.f32.mrb[29].mxu0  ;;  %v634_v33 = vadd.f32 %v1974_v48, %v633_v29 }
 0x134   : > { %v1314_v34 = vpop.f32.mrb[29].mxu1  ;;  %v1494_v35 = vpop.eup %1493  ;;  %868 = vst [vmem:[%s1987_s29 + $0x58] sm:$0xff] %v1492_v30 }
 0x135   : > { %911 = vst [vmem:[%s1987_s29 + $0x1b0] sm:$0xff] %v1494_v35  ;;  %1503 = vtanh.f32 %v419_v31 }
 0x136   : > { %1505 = vtanh.f32 %v634_v33  ;;  %v423_v36 = vpop.f32.mrb[30].mxu0  ;;  %v638_v37 = vpop.f32.mrb[30].mxu1 }
 0x137   : > { %v1496_v38 = vpop.eup %1495  ;;  %v424_v39 = vadd.f32 %v1974_v48, %v423_v36  ;;  %v1188_v40 = vpop.f32.mrb[31].mxu0  ;;  %v639_v41 = vadd.f32 %v1974_v48, %v638_v37 }
 0x138   : > { %v1317_v42 = vpop.f32.mrb[31].mxu1  ;;  %v1498_v43 = vpop.eup %1497  ;;  %869 = vst [vmem:[%s1987_s29 + $0x60] sm:$0xff] %v1496_v38 }
 0x139   : > { %912 = vst [vmem:[%s1987_s29 + $0x1b8] sm:$0xff] %v1498_v43  ;;  %1507 = vtanh.f32 %v424_v39 }
 0x13a   : > { %1509 = vtanh.f32 %v639_v41  ;;  %v428_v44 = vpop.f32.mrb[32].mxu0  ;;  %v643_v45 = vpop.f32.mrb[32].mxu1 }
 0x13b   : > { %v1500_v46 = vpop.eup %1499  ;;  %v429_v47 = vadd.f32 %v1974_v48, %v428_v44  ;;  %v1191_v49 = vpop.f32.mrb[33].mxu0  ;;  %v644_v50 = vadd.f32 %v1974_v48, %v643_v45 }
 0x13c   : > { %v1320_v51 = vpop.f32.mrb[33].mxu1  ;;  %v1502_v52 = vpop.eup %1501  ;;  %870 = vst [vmem:[%s1987_s29 + $0x68] sm:$0xff] %v1500_v46 }
 0x13d   : > { %913 = vst [vmem:[%s1987_s29 + $0x1c0] sm:$0xff] %v1502_v52  ;;  %1511 = vtanh.f32 %v429_v47 }
 0x13e   : > { %1513 = vtanh.f32 %v644_v50  ;;  %v433_v53 = vpop.f32.mrb[34].mxu0  ;;  %v648_v54 = vpop.f32.mrb[34].mxu1 }
 0x13f   : > { %v1504_v55 = vpop.eup %1503  ;;  %v434_v6 = vadd.f32 %v1974_v48, %v433_v53  ;;  %v1194_v56 = vpop.f32.mrb[35].mxu0  ;;  %v649_v57 = vadd.f32 %v1974_v48, %v648_v54 }
 0x140   : > { %v1323_v58 = vpop.f32.mrb[35].mxu1  ;;  %v1506_v59 = vpop.eup %1505  ;;  %871 = vst [vmem:[%s1987_s29 + $0x70] sm:$0xff] %v1504_v55 }
 0x141   : > { %914 = vst [vmem:[%s1987_s29 + $0x1c8] sm:$0xff] %v1506_v59  ;;  %1515 = vtanh.f32 %v434_v6 }
 0x142   : > { %1517 = vtanh.f32 %v649_v57  ;;  %v438_v60 = vpop.f32.mrb[36].mxu0  ;;  %v653_v61 = vpop.f32.mrb[36].mxu1 }
 0x143   : > { %v1508_v62 = vpop.eup %1507  ;;  %v439_v63 = vadd.f32 %v1974_v48, %v438_v60  ;;  %v1197_v0 = vpop.f32.mrb[37].mxu0  ;;  %v654_v1 = vadd.f32 %v1974_v48, %v653_v61 }
 0x144   : > { %v1326_v2 = vpop.f32.mrb[37].mxu1  ;;  %v1510_v3 = vpop.eup %1509  ;;  %872 = vst [vmem:[%s1987_s29 + $0x78] sm:$0xff] %v1508_v62 }
 0x145   : > { %915 = vst [vmem:[%s1987_s29 + $0x1d0] sm:$0xff] %v1510_v3  ;;  %1519 = vtanh.f32 %v439_v63 }
 0x146   : > { %1521 = vtanh.f32 %v654_v1  ;;  %v443_v4 = vpop.f32.mrb[38].mxu0  ;;  %v658_v5 = vpop.f32.mrb[38].mxu1 }
 0x147   : > { %v1512_v7 = vpop.eup %1511  ;;  %v444_v8 = vadd.f32 %v1974_v48, %v443_v4  ;;  %v1200_v9 = vpop.f32.mrb[39].mxu0  ;;  %v659_v10 = vadd.f32 %v1974_v48, %v658_v5 }
 0x148   : > { %v1329_v11 = vpop.f32.mrb[39].mxu1  ;;  %v1514_v12 = vpop.eup %1513  ;;  %873 = vst [vmem:[%s1987_s29 + $0x80] sm:$0xff] %v1512_v7 }
 0x149   : > { %916 = vst [vmem:[%s1987_s29 + $0x1d8] sm:$0xff] %v1514_v12  ;;  %1523 = vtanh.f32 %v444_v8 }
 0x14a   : > { %1525 = vtanh.f32 %v659_v10  ;;  %v448_v13 = vpop.f32.mrb[40].mxu0  ;;  %v663_v14 = vpop.f32.mrb[40].mxu1 }
 0x14b   : > { %v1516_v15 = vpop.eup %1515  ;;  %v449_v16 = vadd.f32 %v1974_v48, %v448_v13  ;;  %v1203_v17 = vpop.f32.mrb[41].mxu0  ;;  %v664_v18 = vadd.f32 %v1974_v48, %v663_v14 }
 0x14c   : > { %v1332_v19 = vpop.f32.mrb[41].mxu1  ;;  %v1518_v20 = vpop.eup %1517  ;;  %874 = vst [vmem:[%s1987_s29 + $0x88] sm:$0xff] %v1516_v15 }
 0x14d   : > { %917 = vst [vmem:[%s1987_s29 + $0x1e0] sm:$0xff] %v1518_v20  ;;  %1527 = vtanh.f32 %v449_v16 }
 0x14e   : > { %1529 = vtanh.f32 %v664_v18  ;;  %v453_v21 = vpop.f32.mrb[42].mxu0  ;;  %v668_v22 = vpop.f32.mrb[42].mxu1 }
 0x14f   : > { %v1520_v23 = vpop.eup %1519  ;;  %v454_v24 = vadd.f32 %v1974_v48, %v453_v21  ;;  %v1206_v25 = vpop.f32.mrb[43].mxu0  ;;  %v669_v26 = vadd.f32 %v1974_v48, %v668_v22 }
 0x150   : > { %v1335_v27 = vpop.f32.mrb[43].mxu1  ;;  %v1522_v28 = vpop.eup %1521  ;;  %875 = vst [vmem:[%s1987_s29 + $0x90] sm:$0xff] %v1520_v23 }
 0x151   : > { %918 = vst [vmem:[%s1987_s29 + $0x1e8] sm:$0xff] %v1522_v28  ;;  %1531 = vtanh.f32 %v454_v24 }
 0x152   : > { %1533 = vtanh.f32 %v669_v26  ;;  %v458_v29 = vpop.f32.mrb[44].mxu0  ;;  %v673_v30 = vpop.f32.mrb[44].mxu1 }
 0x153   : > { %v1524_v31 = vpop.eup %1523  ;;  %v459_v32 = vadd.f32 %v1974_v48, %v458_v29  ;;  %v1209_v33 = vpop.f32.mrb[45].mxu0  ;;  %v674_v34 = vadd.f32 %v1974_v48, %v673_v30 }
 0x154   : > { %v1338_v35 = vpop.f32.mrb[45].mxu1  ;;  %v1526_v36 = vpop.eup %1525  ;;  %876 = vst [vmem:[%s1987_s29 + $0x98] sm:$0xff] %v1524_v31 }
 0x155   : > { %919 = vst [vmem:[%s1987_s29 + $0x1f0] sm:$0xff] %v1526_v36  ;;  %1535 = vtanh.f32 %v459_v32 }
 0x156   : > { %1537 = vtanh.f32 %v674_v34  ;;  %v463_v37 = vpop.f32.mrb[46].mxu0  ;;  %v678_v38 = vpop.f32.mrb[46].mxu1 }
 0x157   : > { %v1528_v39 = vpop.eup %1527  ;;  %v464_v40 = vadd.f32 %v1974_v48, %v463_v37  ;;  %v1212_v41 = vpop.f32.mrb[47].mxu0  ;;  %v679_v42 = vadd.f32 %v1974_v48, %v678_v38 }
 0x158   : > { %v1341_v43 = vpop.f32.mrb[47].mxu1  ;;  %v1530_v44 = vpop.eup %1529  ;;  %877 = vst [vmem:[%s1987_s29 + $0xa0] sm:$0xff] %v1528_v39 }
 0x159   : > { %920 = vst [vmem:[%s1987_s29 + $0x1f8] sm:$0xff] %v1530_v44  ;;  %1539 = vtanh.f32 %v464_v40 }
 0x15a   : > { %1541 = vtanh.f32 %v679_v42  ;;  %v468_v45 = vpop.f32.mrb[48].mxu0  ;;  %v683_v46 = vpop.f32.mrb[48].mxu1 }
 0x15b   : > { %v1532_v47 = vpop.eup %1531  ;;  %v469_v49 = vadd.f32 %v1974_v48, %v468_v45  ;;  %v1215_v50 = vpop.f32.mrb[49].mxu0  ;;  %v684_v51 = vadd.f32 %v1974_v48, %v683_v46 }
 0x15c   : > { %v1344_v52 = vpop.f32.mrb[49].mxu1  ;;  %v1534_v53 = vpop.eup %1533  ;;  %878 = vst [vmem:[%s1987_s29 + $0xa8] sm:$0xff] %v1532_v47 }
 0x15d   : > { %921 = vst [vmem:[%s1987_s29 + $0x200] sm:$0xff] %v1534_v53  ;;  %1543 = vtanh.f32 %v469_v49 }
 0x15e   : > { %1545 = vtanh.f32 %v684_v51  ;;  %v473_v54 = vpop.f32.mrb[50].mxu0  ;;  %v688_v55 = vpop.f32.mrb[50].mxu1 }
 0x15f   : > { %v1536_v6 = vpop.eup %1535  ;;  %v474_v56 = vadd.f32 %v1974_v48, %v473_v54  ;;  %v1218_v57 = vpop.f32.mrb[51].mxu0  ;;  %v689_v58 = vadd.f32 %v1974_v48, %v688_v55 }
 0x160   : > { %v1347_v59 = vpop.f32.mrb[51].mxu1  ;;  %v1538_v60 = vpop.eup %1537  ;;  %879 = vst [vmem:[%s1987_s29 + $0xb0] sm:$0xff] %v1536_v6 }
 0x161   : > { %922 = vst [vmem:[%s1987_s29 + $0x208] sm:$0xff] %v1538_v60  ;;  %1547 = vtanh.f32 %v474_v56 }
 0x162   : > { %1549 = vtanh.f32 %v689_v58  ;;  %v478_v61 = vpop.f32.mrb[52].mxu0  ;;  %v693_v62 = vpop.f32.mrb[52].mxu1 }
 0x163   : > { %v1540_v63 = vpop.eup %1539  ;;  %v479_v0 = vadd.f32 %v1974_v48, %v478_v61  ;;  %v1221_v1 = vpop.f32.mrb[53].mxu0  ;;  %v694_v2 = vadd.f32 %v1974_v48, %v693_v62 }
 0x164   : > { %v1350_v3 = vpop.f32.mrb[53].mxu1  ;;  %v1542_v4 = vpop.eup %1541  ;;  %880 = vst [vmem:[%s1987_s29 + $0xb8] sm:$0xff] %v1540_v63 }
 0x165   : > { %923 = vst [vmem:[%s1987_s29 + $0x210] sm:$0xff] %v1542_v4  ;;  %1551 = vtanh.f32 %v479_v0 }
 0x166   : > { %1553 = vtanh.f32 %v694_v2  ;;  %v483_v5 = vpop.f32.mrb[54].mxu0  ;;  %v698_v7 = vpop.f32.mrb[54].mxu1 }
 0x167   : > { %v1544_v8 = vpop.eup %1543  ;;  %v484_v9 = vadd.f32 %v1974_v48, %v483_v5  ;;  %v1224_v10 = vpop.f32.mrb[55].mxu0  ;;  %v699_v11 = vadd.f32 %v1974_v48, %v698_v7 }
 0x168   : > { %v1353_v12 = vpop.f32.mrb[55].mxu1  ;;  %v1546_v13 = vpop.eup %1545  ;;  %881 = vst [vmem:[%s1987_s29 + $0xc0] sm:$0xff] %v1544_v8 }
 0x169   : > { %924 = vst [vmem:[%s1987_s29 + $0x218] sm:$0xff] %v1546_v13  ;;  %1555 = vtanh.f32 %v484_v9 }
 0x16a   : > { %1557 = vtanh.f32 %v699_v11  ;;  %v488_v14 = vpop.f32.mrb[56].mxu0  ;;  %v703_v15 = vpop.f32.mrb[56].mxu1 }
 0x16b   : > { %v1548_v16 = vpop.eup %1547  ;;  %v489_v17 = vadd.f32 %v1974_v48, %v488_v14  ;;  %v1227_v18 = vpop.f32.mrb[57].mxu0  ;;  %v704_v19 = vadd.f32 %v1974_v48, %v703_v15 }
 0x16c   : > { %v1356_v20 = vpop.f32.mrb[57].mxu1  ;;  %v1550_v21 = vpop.eup %1549  ;;  %882 = vst [vmem:[%s1987_s29 + $0xc8] sm:$0xff] %v1548_v16 }
 0x16d   : > { %925 = vst [vmem:[%s1987_s29 + $0x220] sm:$0xff] %v1550_v21  ;;  %1559 = vtanh.f32 %v489_v17 }
 0x16e   : > { %1561 = vtanh.f32 %v704_v19  ;;  %v493_v22 = vpop.f32.mrb[58].mxu0  ;;  %v708_v23 = vpop.f32.mrb[58].mxu1 }
 0x16f   : > { %v1552_v24 = vpop.eup %1551  ;;  %v494_v25 = vadd.f32 %v1974_v48, %v493_v22  ;;  %v1230_v26 = vpop.f32.mrb[59].mxu0  ;;  %v709_v27 = vadd.f32 %v1974_v48, %v708_v23 }
 0x170   : > { %v1359_v28 = vpop.f32.mrb[59].mxu1  ;;  %v1554_v29 = vpop.eup %1553  ;;  %883 = vst [vmem:[%s1987_s29 + $0xd0] sm:$0xff] %v1552_v24 }
 0x171   : > { %926 = vst [vmem:[%s1987_s29 + $0x228] sm:$0xff] %v1554_v29  ;;  %1563 = vtanh.f32 %v494_v25 }
 0x172   : > { %1565 = vtanh.f32 %v709_v27  ;;  %v498_v30 = vpop.f32.mrb[60].mxu0  ;;  %v713_v31 = vpop.f32.mrb[60].mxu1 }
 0x173   : > { %v1556_v32 = vpop.eup %1555  ;;  %v499_v33 = vadd.f32 %v1974_v48, %v498_v30  ;;  %v1233_v34 = vpop.f32.mrb[61].mxu0  ;;  %v714_v35 = vadd.f32 %v1974_v48, %v713_v31 }
 0x174   : > { %v1362_v36 = vpop.f32.mrb[61].mxu1  ;;  %v1558_v37 = vpop.eup %1557  ;;  %884 = vst [vmem:[%s1987_s29 + $0xd8] sm:$0xff] %v1556_v32 }
 0x175   : > { %927 = vst [vmem:[%s1987_s29 + $0x230] sm:$0xff] %v1558_v37  ;;  %1567 = vtanh.f32 %v499_v33 }
 0x176   : > { %1569 = vtanh.f32 %v714_v35  ;;  %v503_v38 = vpop.f32.mrb[62].mxu0  ;;  %v718_v39 = vpop.f32.mrb[62].mxu1 }
 0x177   : > { %v1560_v40 = vpop.eup %1559  ;;  %v504_v41 = vadd.f32 %v1974_v48, %v503_v38  ;;  %v1236_v42 = vpop.f32.mrb[63].mxu0  ;;  %v719_v43 = vadd.f32 %v1974_v48, %v718_v39 }
 0x178   : > { %v1365_v44 = vpop.f32.mrb[63].mxu1  ;;  %v1562_v45 = vpop.eup %1561  ;;  %885 = vst [vmem:[%s1987_s29 + $0xe0] sm:$0xff] %v1560_v40 }
 0x179   : > { %928 = vst [vmem:[%s1987_s29 + $0x238] sm:$0xff] %v1562_v45  ;;  %1571 = vtanh.f32 %v504_v41 }
 0x17a   : > { %1573 = vtanh.f32 %v719_v43  ;;  %v508_v46 = vpop.f32.mrb[64].mxu0  ;;  %v723_v47 = vpop.f32.mrb[64].mxu1 }
 0x17b   : > { %v1564_v49 = vpop.eup %1563  ;;  %v509_v50 = vadd.f32 %v1974_v48, %v508_v46  ;;  %v1239_v51 = vpop.f32.mrb[65].mxu0  ;;  %v724_v52 = vadd.f32 %v1974_v48, %v723_v47 }
 0x17c   : > { %v1368_v53 = vpop.f32.mrb[65].mxu1  ;;  %v1566_v54 = vpop.eup %1565  ;;  %886 = vst [vmem:[%s1987_s29 + $0xe8] sm:$0xff] %v1564_v49 }
 0x17d   : > { %929 = vst [vmem:[%s1987_s29 + $0x240] sm:$0xff] %v1566_v54  ;;  %1575 = vtanh.f32 %v509_v50 }
 0x17e   : > { %1577 = vtanh.f32 %v724_v52  ;;  %v513_v55 = vpop.f32.mrb[66].mxu0  ;;  %v728_v6 = vpop.f32.mrb[66].mxu1 }
 0x17f   : > { %v1568_v56 = vpop.eup %1567  ;;  %v514_v57 = vadd.f32 %v1974_v48, %v513_v55  ;;  %v1242_v58 = vpop.f32.mrb[67].mxu0  ;;  %v729_v59 = vadd.f32 %v1974_v48, %v728_v6 }
 0x180   : > { %v1371_v60 = vpop.f32.mrb[67].mxu1  ;;  %v1570_v61 = vpop.eup %1569  ;;  %887 = vst [vmem:[%s1987_s29 + $0xf0] sm:$0xff] %v1568_v56 }
 0x181   : > { %930 = vst [vmem:[%s1987_s29 + $0x248] sm:$0xff] %v1570_v61  ;;  %1579 = vtanh.f32 %v514_v57 }
 0x182   : > { %1581 = vtanh.f32 %v729_v59  ;;  %v518_v62 = vpop.f32.mrb[68].mxu0  ;;  %v733_v63 = vpop.f32.mrb[68].mxu1 }
 0x183   : > { %v1572_v0 = vpop.eup %1571  ;;  %v519_v1 = vadd.f32 %v1974_v48, %v518_v62  ;;  %v1245_v2 = vpop.f32.mrb[69].mxu0  ;;  %v734_v3 = vadd.f32 %v1974_v48, %v733_v63 }
 0x184   : > { %v1374_v4 = vpop.f32.mrb[69].mxu1  ;;  %v1574_v5 = vpop.eup %1573  ;;  %888 = vst [vmem:[%s1987_s29 + $0xf8] sm:$0xff] %v1572_v0 }
 0x185   : > { %931 = vst [vmem:[%s1987_s29 + $0x250] sm:$0xff] %v1574_v5  ;;  %1583 = vtanh.f32 %v519_v1 }
 0x186   : > { %1585 = vtanh.f32 %v734_v3  ;;  %v523_v7 = vpop.f32.mrb[70].mxu0  ;;  %v738_v8 = vpop.f32.mrb[70].mxu1 }
 0x187   : > { %v1576_v9 = vpop.eup %1575  ;;  %v524_v10 = vadd.f32 %v1974_v48, %v523_v7  ;;  %v1248_v11 = vpop.f32.mrb[71].mxu0  ;;  %v739_v12 = vadd.f32 %v1974_v48, %v738_v8 }
 0x188   : > { %v1377_v13 = vpop.f32.mrb[71].mxu1  ;;  %v1578_v14 = vpop.eup %1577  ;;  %889 = vst [vmem:[%s1987_s29 + $0x100] sm:$0xff] %v1576_v9 }
 0x189   : > { %932 = vst [vmem:[%s1987_s29 + $0x258] sm:$0xff] %v1578_v14  ;;  %1587 = vtanh.f32 %v524_v10 }
 0x18a   : > { %1589 = vtanh.f32 %v739_v12  ;;  %v528_v15 = vpop.f32.mrb[72].mxu0  ;;  %v743_v16 = vpop.f32.mrb[72].mxu1 }
 0x18b   : > { %v1580_v17 = vpop.eup %1579  ;;  %v529_v18 = vadd.f32 %v1974_v48, %v528_v15  ;;  %v1251_v19 = vpop.f32.mrb[73].mxu0  ;;  %v744_v20 = vadd.f32 %v1974_v48, %v743_v16 }
 0x18c   : > { %v1380_v21 = vpop.f32.mrb[73].mxu1  ;;  %v1582_v22 = vpop.eup %1581  ;;  %890 = vst [vmem:[%s1987_s29 + $0x108] sm:$0xff] %v1580_v17 }
 0x18d   : > { %933 = vst [vmem:[%s1987_s29 + $0x260] sm:$0xff] %v1582_v22  ;;  %1591 = vtanh.f32 %v529_v18 }
 0x18e   : > { %1593 = vtanh.f32 %v744_v20  ;;  %v533_v23 = vpop.f32.mrb[74].mxu0  ;;  %v748_v24 = vpop.f32.mrb[74].mxu1 }
 0x18f   : > { %v1584_v25 = vpop.eup %1583  ;;  %v534_v26 = vadd.f32 %v1974_v48, %v533_v23  ;;  %v1254_v27 = vpop.f32.mrb[75].mxu0  ;;  %v749_v28 = vadd.f32 %v1974_v48, %v748_v24 }
 0x190   : > { %v1383_v29 = vpop.f32.mrb[75].mxu1  ;;  %v1586_v30 = vpop.eup %1585  ;;  %891 = vst [vmem:[%s1987_s29 + $0x110] sm:$0xff] %v1584_v25 }
 0x191   : > { %934 = vst [vmem:[%s1987_s29 + $0x268] sm:$0xff] %v1586_v30  ;;  %1595 = vtanh.f32 %v534_v26 }
 0x192   : > { %1597 = vtanh.f32 %v749_v28  ;;  %v538_v31 = vpop.f32.mrb[76].mxu0  ;;  %v753_v32 = vpop.f32.mrb[76].mxu1 }
 0x193   : > { %v1588_v33 = vpop.eup %1587  ;;  %v539_v34 = vadd.f32 %v1974_v48, %v538_v31  ;;  %v1257_v35 = vpop.f32.mrb[77].mxu0  ;;  %v754_v36 = vadd.f32 %v1974_v48, %v753_v32 }
 0x194   : > { %v1386_v37 = vpop.f32.mrb[77].mxu1  ;;  %v1590_v38 = vpop.eup %1589  ;;  %892 = vst [vmem:[%s1987_s29 + $0x118] sm:$0xff] %v1588_v33 }
 0x195   : > { %935 = vst [vmem:[%s1987_s29 + $0x270] sm:$0xff] %v1590_v38  ;;  %1599 = vtanh.f32 %v539_v34 }
 0x196   : > { %1601 = vtanh.f32 %v754_v36  ;;  %v543_v39 = vpop.f32.mrb[78].mxu0  ;;  %v758_v40 = vpop.f32.mrb[78].mxu1 }
 0x197   : > { %v1592_v41 = vpop.eup %1591  ;;  %v544_v42 = vadd.f32 %v1974_v48, %v543_v39  ;;  %v1260_v43 = vpop.f32.mrb[79].mxu0  ;;  %v759_v44 = vadd.f32 %v1974_v48, %v758_v40 }
 0x198   : > { %v1389_v45 = vpop.f32.mrb[79].mxu1  ;;  %v1594_v46 = vpop.eup %1593  ;;  %893 = vst [vmem:[%s1987_s29 + $0x120] sm:$0xff] %v1592_v41 }
 0x199   : > { %936 = vst [vmem:[%s1987_s29 + $0x278] sm:$0xff] %v1594_v46  ;;  %1603 = vtanh.f32 %v544_v42 }
 0x19a   : > { %1605 = vtanh.f32 %v759_v44  ;;  %v548_v47 = vpop.f32.mrb[80].mxu0  ;;  %v763_v49 = vpop.f32.mrb[80].mxu1 }
 0x19b   : > { %v1596_v50 = vpop.eup %1595  ;;  %v549_v51 = vadd.f32 %v1974_v48, %v548_v47  ;;  %v1263_v52 = vpop.f32.mrb[81].mxu0  ;;  %v764_v53 = vadd.f32 %v1974_v48, %v763_v49 }
 0x19c   : > { %v1392_v54 = vpop.f32.mrb[81].mxu1  ;;  %v1598_v55 = vpop.eup %1597  ;;  %894 = vst [vmem:[%s1987_s29 + $0x128] sm:$0xff] %v1596_v50 }
 0x19d   : > { %937 = vst [vmem:[%s1987_s29 + $0x280] sm:$0xff] %v1598_v55  ;;  %1607 = vtanh.f32 %v549_v51 }
 0x19e   : > { %1609 = vtanh.f32 %v764_v53  ;;  %v553_v6 = vpop.f32.mrb[82].mxu0  ;;  %v768_v56 = vpop.f32.mrb[82].mxu1 }
 0x19f   : > { %v1600_v57 = vpop.eup %1599  ;;  %v554_v58 = vadd.f32 %v1974_v48, %v553_v6  ;;  %v1266_v59 = vpop.f32.mrb[83].mxu0  ;;  %v769_v60 = vadd.f32 %v1974_v48, %v768_v56 }
 0x1a0   : > { %v1395_v61 = vpop.f32.mrb[83].mxu1  ;;  %v1602_v62 = vpop.eup %1601  ;;  %895 = vst [vmem:[%s1987_s29 + $0x130] sm:$0xff] %v1600_v57 }
 0x1a1   : > { %938 = vst [vmem:[%s1987_s29 + $0x288] sm:$0xff] %v1602_v62  ;;  %1611 = vtanh.f32 %v554_v58 }
 0x1a2   : > { %1613 = vtanh.f32 %v769_v60  ;;  %v558_v63 = vpop.f32.mrb[84].mxu0 }
 0x1a3   : > { %v1604_v0 = vpop.eup %1603  ;;  %v559_v1 = vadd.f32 %v1974_v48, %v558_v63  ;;  %v1269_v2 = vpop.f32.mrb[85].mxu0 }
 0x1a4   : > { %v1606_v3 = vpop.eup %1605  ;;  %896 = vst [vmem:[%s1987_s29 + $0x138] sm:$0xff] %v1604_v0 }
 0x1a5   : > { %939 = vst [vmem:[%s1987_s29 + $0x290] sm:$0xff] %v1606_v3  ;;  %1615 = vtanh.f32 %v559_v1 }
 0x1a7   : > { %v1608_v4 = vpop.eup %1607 }
 0x1a8   : > { %v1610_v5 = vpop.eup %1609  ;;  %897 = vst [vmem:[%s1987_s29 + $0x140] sm:$0xff] %v1608_v4 }
 0x1a9   : > { %940 = vst [vmem:[%s1987_s29 + $0x298] sm:$0xff] %v1610_v5 }
 0x1ab   : > { %v1612_v7 = vpop.eup %1611 }
 0x1ac   : > { %v1614_v8 = vpop.eup %1613  ;;  %898 = vst [vmem:[%s1987_s29 + $0x148] sm:$0xff] %v1612_v7 }
 0x1ad   : > { %941 = vst [vmem:[%s1987_s29 + $0x2a0] sm:$0xff] %v1614_v8 }
 0x1af   : > { %v1616_v9 = vpop.eup %1615 }
 0x1b0   : > { %899 = vst [vmem:[%s1987_s29 + $0x150] sm:$0xff] %v1616_v9 }
 0x1b1 PF: > { %s13_s12 = sadd.s32 1, %s1623_s12  }
 0x1b2   : > { %p10_p4 = scmp.ge.s32.totalorder %s13_s12, 4  }
 0x1b4   :  { %12 = sbr.rel (!%p10_p4) target bundleno = 1 (0x1), region = 62 }

</bundles_post_ra>
